<compile_context>
chip_gen: v5e
topology: v5e:2x2
jax: 0.10.0
libtpu: 0.0.40
codegen_flags: <defaults>
</compile_context>

<pallas_src>
import jax
import jax.numpy as jnp
from jax import lax
from jax.experimental import pallas as pl
from jax.experimental.pallas import tpu as pltpu

LN_EPS = 1e-5  # torch.nn.LayerNorm default


def _round_up(x, m):
    return ((x + m - 1) // m) * m


def _pick_nb(n_pad, block_n):
    """Largest multiple-of-8 divisor of n_pad that is <= block_n, preferring
    choices that leave >= 2 grid steps (so v7x's two TCs both run)."""
    cap = max(8, (min(block_n, n_pad) // 8) * 8)
    divs = [k for k in range(8, cap + 1, 8) if n_pad % k == 0]
    multi = [k for k in divs if n_pad // k >= 2]
    if multi:
        return max(multi)
    return max(divs) if divs else 8


def _tal_kernel(hs_ref, wbd_ref, p_ref, s_ref, sb_ref, su_ref, e_ref, f_ref,
                out_ref):
    # hs_ref : (NB, T*D)   hidden states, time packed into lanes
    # wbd_ref: (T*D, T*A)  block-diagonal Linear weight
    # p_ref  : (3, T*A)    [bias, gamma, beta], each tiled T times along lanes
    # s_ref  : (T*A, T)    segment-sum       S[t*A+j, t] = 1
    # sb_ref : (T, T*A)    segment-broadcast S^T
    # su_ref : (T*A, T)    S * u_agg (attention inner product, segment folded)
    # e_ref  : (T, T*D)    probs -> per-time-step broadcast over D lanes
    # f_ref  : (T*D, D)    fold (sum over time) back down to D lanes
    # out_ref: (NB, 2*D)   [agg_state, h_{T-1}]
    td = hs_ref.shape[1]
    d = f_ref.shape[1]
    t = s_ref.shape[1]
    a = p_ref.shape[1] // t
    inv_a = 1.0 / a

    hs = hs_ref[...]                                            # (NB, T*D)

    bias = p_ref[0:1, :]                                        # (1, T*A)
    gamma = p_ref[1:2, :]
    beta = p_ref[2:3, :]

    # --- Linear(D -> A) for all T steps at once (lane-dense MXU matmul) -----
    proj = jnp.dot(hs, wbd_ref[...],
                   preferred_element_type=jnp.float32) + bias   # (NB, T*A)

    # --- LayerNorm over each A-wide (per-time-step) lane segment ------------
    # Two-pass, biased variance, eps inside the sqrt (torch semantics).
    seg_mean = jnp.dot(proj, s_ref[...],
                       preferred_element_type=jnp.float32) * inv_a   # (NB, T)
    mean_b = jnp.dot(seg_mean, sb_ref[...],
                     preferred_element_type=jnp.float32)             # (NB, T*A)
    centered = proj - mean_b
    seg_var = jnp.dot(centered * centered, s_ref[...],
                      preferred_element_type=jnp.float32) * inv_a    # (NB, T)
    inv_std = lax.rsqrt(seg_var + LN_EPS)                            # (NB, T)
    inv_std_b = jnp.dot(inv_std, sb_ref[...],
                        preferred_element_type=jnp.float32)          # (NB, T*A)
    normed = centered * inv_std_b * gamma + beta

    # --- tanh + attention scores <act_t, u_agg> ------------------------------
    act = jnp.tanh(normed)                                           # (NB, T*A)
    score = jnp.dot(act, su_ref[...],
                    preferred_element_type=jnp.float32)              # (NB, T)

    # --- softmax over time (exact divide; probs sum to 1) --------------------
    m = jnp.max(score, axis=-1, keepdims=True)
    e = jnp.exp(score - m)
    denom = jnp.sum(e, axis=-1, keepdims=True)
    probs = e / denom                                                # (NB, T)

    # --- agg[n, d] = sum_t probs[n, t] * hs[n, t*D + d] -----------------------
    probs_exp = jnp.dot(probs, e_ref[...],
                        preferred_element_type=jnp.float32)          # (NB, T*D)
    agg = jnp.dot(probs_exp * hs, f_ref[...],
                  preferred_element_type=jnp.float32)                # (NB, D)

    last = hs[:, td - d:]                                            # (NB, D)

    # Single contiguous full-block store of both halves.
    out_ref[...] = jnp.concatenate([agg, last], axis=-1).astype(out_ref.dtype)


def temporal_attention_layer(hidden_states, w_t, bias, gamma, beta, u_agg,
                             *, block_n=512):
    """hidden_states: (N, T, D) f32. w_t: (D, A) = Linear weight transposed.
    bias/gamma/beta/u_agg: (A,). Returns (N, 2*D) = [agg_state, h_{T-1}]."""
    n, t, d = hidden_states.shape
    a = w_t.shape[1]
    f32 = jnp.float32

    hidden_states = hidden_states.astype(f32)
    # Pad only to the sublane multiple (<= 7 extra rows), never to a full block.
    n_pad = _round_up(n, 8)
    if n_pad != n:
        hidden_states = jnp.pad(hidden_states,
                                ((0, n_pad - n), (0, 0), (0, 0)))
    hs_flat = hidden_states.reshape(n_pad, t * d)   # free: row-major contiguous

    nb = _pick_nb(n_pad, block_n)

    # --- constant operator matrices (built once in the wrapper) --------------
    eye_t = jnp.eye(t, dtype=f32)
    wbd = jnp.einsum("uv,da->udva", eye_t, w_t.astype(f32)).reshape(t * d, t * a)
    params = jnp.stack([jnp.tile(bias.astype(f32), t),
                        jnp.tile(gamma.astype(f32), t),
                        jnp.tile(beta.astype(f32), t)], axis=0)      # (3, T*A)
    s_mat = jnp.repeat(eye_t, a, axis=0)                             # (T*A, T)
    sb_mat = s_mat.T                                                 # (T, T*A)
    su_mat = s_mat * jnp.tile(u_agg.astype(f32), t)[:, None]         # (T*A, T)
    e_mat = jnp.repeat(eye_t, d, axis=1)                             # (T, T*D)
    f_mat = jnp.tile(jnp.eye(d, dtype=f32), (t, 1))                  # (T*D, D)

    grid_spec = pltpu.PrefetchScalarGridSpec(
        num_scalar_prefetch=0,
        grid=(n_pad // nb,),
        in_specs=[
            pl.BlockSpec((nb, t * d), lambda i: (i, 0)),   # hidden states
            pl.BlockSpec((t * d, t * a), lambda i: (0, 0)),
            pl.BlockSpec((3, t * a), lambda i: (0, 0)),
            pl.BlockSpec((t * a, t), lambda i: (0, 0)),
            pl.BlockSpec((t, t * a), lambda i: (0, 0)),
            pl.BlockSpec((t * a, t), lambda i: (0, 0)),
            pl.BlockSpec((t, t * d), lambda i: (0, 0)),
            pl.BlockSpec((t * d, d), lambda i: (0, 0)),
        ],
        out_specs=pl.BlockSpec((nb, 2 * d), lambda i: (i, 0)),
    )

    out = pl.pallas_call(
        _tal_kernel,
        out_shape=jax.ShapeDtypeStruct((n_pad, 2 * d), f32),
        grid_spec=grid_spec,
        compiler_params=pltpu.CompilerParams(
            dimension_semantics=("parallel",),   # shards steps across v7x's 2 TCs
        ),
    )(hs_flat, wbd, params, s_mat, sb_mat, su_mat, e_mat, f_mat)

    return out[:n]


def _reference(hidden_states, w_t, bias, gamma, beta, u_agg):
    """Pure-JAX reference mirroring the PyTorch forward."""
    proj = jnp.einsum("ntd,da->nta", hidden_states, w_t) + bias
    mean = jnp.mean(proj, axis=-1, keepdims=True)
    var = jnp.mean((proj - mean) ** 2, axis=-1, keepdims=True)
    normed = (proj - mean) / jnp.sqrt(var + LN_EPS) * gamma + beta
    act = jnp.tanh(normed)
    score = jnp.einsum("nta,a->nt", act, u_agg)
    probs = jax.nn.softmax(score, axis=1)
    agg = jnp.einsum("nt,ntd->nd", probs, hidden_states)
    return jnp.concatenate([agg, hidden_states[:, -1]], axis=1)


def _make_inputs(key, n, t, d, a):
    k_hs, k_w, k_b, k_u = jax.random.split(key, 4)
    hidden_states = jax.random.normal(k_hs, (n, t, d), dtype=jnp.float32)
    bound = 1.0 / jnp.sqrt(d)
    w_t = jax.random.uniform(k_w, (d, a), minval=-bound, maxval=bound,
                             dtype=jnp.float32)            # Linear weight^T
    bias = jax.random.uniform(k_b, (a,), minval=-bound, maxval=bound,
                              dtype=jnp.float32)            # Linear bias
    gamma = jnp.ones((a,), jnp.float32)                     # LayerNorm weight
    beta = jnp.zeros((a,), jnp.float32)                     # LayerNorm bias
    u_agg = jax.random.uniform(k_u, (a,), minval=0.0, maxval=1.0,
                               dtype=jnp.float32)           # nn.init.uniform_
    return hidden_states, w_t, bias, gamma, beta, u_agg


if __name__ == "__main__":
    key = jax.random.PRNGKey(0)
    k1, k2, k3 = jax.random.split(key, 3)
    t, d, a = 8, 32, 16

    # Config 1: multi-step grid (exercises the megacore "parallel" axis).
    n = 16
    hs, w_t, b, g, be, u = _make_inputs(k1, n, t, d, a)
    out = jax.block_until_ready(
        temporal_attention_layer(hs, w_t, b, g, be, u, block_n=8))
    ref = _reference(hs, w_t, b, g, be, u)
    assert out.shape == (n, 2 * d)
    assert jnp.allclose(out, ref, atol=2e-3, rtol=2e-3), "mismatch (config 1)"

    # Config 2: batch not a multiple of 8 (pad-to-8 + slice path), default block_n.
    n2 = 5
    hs2, w_t2, b2, g2, be2, u2 = _make_inputs(k2, n2, t, d, a)
    out2 = jax.block_until_ready(
        temporal_attention_layer(hs2, w_t2, b2, g2, be2, u2))
    ref2 = _reference(hs2, w_t2, b2, g2, be2, u2)
    assert out2.shape == (n2, 2 * d)
    assert jnp.allclose(out2, ref2, atol=2e-3, rtol=2e-3), "mismatch (config 2)"

    # Config 3: default block_n; nb = largest multiple-of-8 divisor with >=2 steps.
    n3 = 48
    hs3, w_t3, b3, g3, be3, u3 = _make_inputs(k3, n3, t, d, a)
    out3 = jax.block_until_ready(
        temporal_attention_layer(hs3, w_t3, b3, g3, be3, u3))
    ref3 = _reference(hs3, w_t3, b3, g3, be3, u3)
    assert out3.shape == (n3, 2 * d)
    assert jnp.allclose(out3, ref3, atol=2e-3, rtol=2e-3), "mismatch (config 3)"

    print("KERNEL_OK")
</pallas_src>

<mosaic_0001>
module attributes {stable_mosaic.version = 11 : i64} {
  func.func @_tal_kernel(%arg0: i32, %arg1: memref<8x256xf32, #tpu.memory_space<vmem>>, %arg2: memref<256x128xf32, #tpu.memory_space<vmem>>, %arg3: memref<3x128xf32, #tpu.memory_space<vmem>>, %arg4: memref<128x8xf32, #tpu.memory_space<vmem>>, %arg5: memref<8x128xf32, #tpu.memory_space<vmem>>, %arg6: memref<128x8xf32, #tpu.memory_space<vmem>>, %arg7: memref<8x256xf32, #tpu.memory_space<vmem>>, %arg8: memref<256x32xf32, #tpu.memory_space<vmem>>, %arg9: memref<8x64xf32, #tpu.memory_space<vmem>>) attributes {dimension_semantics = [#tpu.dimension_semantics<parallel>], iteration_bounds = array<i64: 2>, scalar_prefetch = 0 : i64, scratch_operands = 0 : i64, tpu.core_type = #tpu.core_type<tc>, window_params = [{transform_indices = @transform_0, window_bounds = array<i64: 8, 256>}, {pipeline_mode = #tpu.pipeline_mode<synchronous>, transform_indices = @transform_1, window_bounds = array<i64: 256, 128>}, {pipeline_mode = #tpu.pipeline_mode<synchronous>, transform_indices = @transform_2, window_bounds = array<i64: 3, 128>}, {pipeline_mode = #tpu.pipeline_mode<synchronous>, transform_indices = @transform_3, window_bounds = array<i64: 128, 8>}, {pipeline_mode = #tpu.pipeline_mode<synchronous>, transform_indices = @transform_4, window_bounds = array<i64: 8, 128>}, {pipeline_mode = #tpu.pipeline_mode<synchronous>, transform_indices = @transform_5, window_bounds = array<i64: 128, 8>}, {pipeline_mode = #tpu.pipeline_mode<synchronous>, transform_indices = @transform_6, window_bounds = array<i64: 8, 256>}, {pipeline_mode = #tpu.pipeline_mode<synchronous>, transform_indices = @transform_7, window_bounds = array<i64: 256, 32>}, {transform_indices = @transform_8, window_bounds = array<i64: 8, 64>}]} {
    %c0 = arith.constant 0 : index
    %c0_0 = arith.constant 0 : index
    %0 = vector.load %arg1[%c0, %c0_0] : memref<8x256xf32, #tpu.memory_space<vmem>>, vector<8x256xf32>
    %c0_1 = arith.constant 0 : index
    %c0_2 = arith.constant 0 : index
    %1 = vector.load %arg3[%c0_1, %c0_2] : memref<3x128xf32, #tpu.memory_space<vmem>>, vector<1x128xf32>
    %c1 = arith.constant 1 : index
    %c0_3 = arith.constant 0 : index
    %2 = vector.load %arg3[%c1, %c0_3] : memref<3x128xf32, #tpu.memory_space<vmem>>, vector<1x128xf32>
    %c2 = arith.constant 2 : index
    %c0_4 = arith.constant 0 : index
    %3 = vector.load %arg3[%c2, %c0_4] : memref<3x128xf32, #tpu.memory_space<vmem>>, vector<1x128xf32>
    %c0_5 = arith.constant 0 : index
    %c0_6 = arith.constant 0 : index
    %4 = vector.load %arg2[%c0_5, %c0_6] : memref<256x128xf32, #tpu.memory_space<vmem>>, vector<256x128xf32>
    %cst = arith.constant dense<0.000000e+00> : vector<8x128xf32>
    %5 = tpu.matmul %0, %4, %cst {dimension_numbers = #tpu.dot_dimension_numbers<[1], [0], [0], [1], [0, 0, 1, 1], [], []>} : vector<8x256xf32>, vector<256x128xf32>, vector<8x128xf32> -> vector<8x128xf32>
    %6 = vector.broadcast %1 : vector<1x128xf32> to vector<8x128xf32>
    %7 = arith.addf %5, %6 : vector<8x128xf32>
    %c0_7 = arith.constant 0 : index
    %c0_8 = arith.constant 0 : index
    %8 = vector.load %arg4[%c0_7, %c0_8] : memref<128x8xf32, #tpu.memory_space<vmem>>, vector<128x8xf32>
    %cst_9 = arith.constant dense<0.000000e+00> : vector<8x8xf32>
    %9 = tpu.matmul %7, %8, %cst_9 {dimension_numbers = #tpu.dot_dimension_numbers<[1], [0], [0], [1], [0, 0, 1, 1], [], []>} : vector<8x128xf32>, vector<128x8xf32>, vector<8x8xf32> -> vector<8x8xf32>
    %cst_10 = arith.constant 6.250000e-02 : f32
    %10 = vector.broadcast %cst_10 : f32 to vector<8x8xf32>
    %11 = arith.mulf %9, %10 : vector<8x8xf32>
    %c0_11 = arith.constant 0 : index
    %c0_12 = arith.constant 0 : index
    %12 = vector.load %arg5[%c0_11, %c0_12] : memref<8x128xf32, #tpu.memory_space<vmem>>, vector<8x128xf32>
    %cst_13 = arith.constant dense<0.000000e+00> : vector<8x128xf32>
    %13 = tpu.matmul %11, %12, %cst_13 {dimension_numbers = #tpu.dot_dimension_numbers<[1], [0], [0], [1], [0, 0, 1, 1], [], []>} : vector<8x8xf32>, vector<8x128xf32>, vector<8x128xf32> -> vector<8x128xf32>
    %14 = arith.subf %7, %13 : vector<8x128xf32>
    %15 = arith.mulf %14, %14 : vector<8x128xf32>
    %c0_14 = arith.constant 0 : index
    %c0_15 = arith.constant 0 : index
    %16 = vector.load %arg4[%c0_14, %c0_15] : memref<128x8xf32, #tpu.memory_space<vmem>>, vector<128x8xf32>
    %cst_16 = arith.constant dense<0.000000e+00> : vector<8x8xf32>
    %17 = tpu.matmul %15, %16, %cst_16 {dimension_numbers = #tpu.dot_dimension_numbers<[1], [0], [0], [1], [0, 0, 1, 1], [], []>} : vector<8x128xf32>, vector<128x8xf32>, vector<8x8xf32> -> vector<8x8xf32>
    %cst_17 = arith.constant 6.250000e-02 : f32
    %18 = vector.broadcast %cst_17 : f32 to vector<8x8xf32>
    %19 = arith.mulf %17, %18 : vector<8x8xf32>
    %cst_18 = arith.constant 9.99999974E-6 : f32
    %20 = vector.broadcast %cst_18 : f32 to vector<8x8xf32>
    %21 = arith.addf %19, %20 : vector<8x8xf32>
    %22 = math.rsqrt %21 : vector<8x8xf32>
    %c0_19 = arith.constant 0 : index
    %c0_20 = arith.constant 0 : index
    %23 = vector.load %arg5[%c0_19, %c0_20] : memref<8x128xf32, #tpu.memory_space<vmem>>, vector<8x128xf32>
    %cst_21 = arith.constant dense<0.000000e+00> : vector<8x128xf32>
    %24 = tpu.matmul %22, %23, %cst_21 {dimension_numbers = #tpu.dot_dimension_numbers<[1], [0], [0], [1], [0, 0, 1, 1], [], []>} : vector<8x8xf32>, vector<8x128xf32>, vector<8x128xf32> -> vector<8x128xf32>
    %25 = arith.mulf %14, %24 : vector<8x128xf32>
    %26 = vector.broadcast %2 : vector<1x128xf32> to vector<8x128xf32>
    %27 = arith.mulf %25, %26 : vector<8x128xf32>
    %28 = vector.broadcast %3 : vector<1x128xf32> to vector<8x128xf32>
    %29 = arith.addf %27, %28 : vector<8x128xf32>
    %30 = math.tanh %29 : vector<8x128xf32>
    %c0_22 = arith.constant 0 : index
    %c0_23 = arith.constant 0 : index
    %31 = vector.load %arg6[%c0_22, %c0_23] : memref<128x8xf32, #tpu.memory_space<vmem>>, vector<128x8xf32>
    %cst_24 = arith.constant dense<0.000000e+00> : vector<8x8xf32>
    %32 = tpu.matmul %30, %31, %cst_24 {dimension_numbers = #tpu.dot_dimension_numbers<[1], [0], [0], [1], [0, 0, 1, 1], [], []>} : vector<8x128xf32>, vector<128x8xf32>, vector<8x8xf32> -> vector<8x8xf32>
    %cst_25 = arith.constant dense<0xFF800000> : vector<8xf32>
    %33 = vector.multi_reduction <maximumf>, %32, %cst_25 [1] : vector<8x8xf32> to vector<8xf32>
    %34 = vector.shape_cast %33 : vector<8xf32> to vector<8x1xf32>
    %35 = vector.broadcast %34 : vector<8x1xf32> to vector<8x8xf32>
    %36 = arith.subf %32, %35 : vector<8x8xf32>
    %37 = math.exp %36 : vector<8x8xf32>
    %cst_26 = arith.constant dense<0.000000e+00> : vector<8xf32>
    %38 = vector.multi_reduction <add>, %37, %cst_26 [1] : vector<8x8xf32> to vector<8xf32>
    %39 = vector.shape_cast %38 : vector<8xf32> to vector<8x1xf32>
    %40 = vector.broadcast %39 : vector<8x1xf32> to vector<8x8xf32>
    %41 = arith.divf %37, %40 : vector<8x8xf32>
    %c0_27 = arith.constant 0 : index
    %c0_28 = arith.constant 0 : index
    %42 = vector.load %arg7[%c0_27, %c0_28] : memref<8x256xf32, #tpu.memory_space<vmem>>, vector<8x256xf32>
    %cst_29 = arith.constant dense<0.000000e+00> : vector<8x256xf32>
    %43 = tpu.matmul %41, %42, %cst_29 {dimension_numbers = #tpu.dot_dimension_numbers<[1], [0], [0], [1], [0, 0, 1, 1], [], []>} : vector<8x8xf32>, vector<8x256xf32>, vector<8x256xf32> -> vector<8x256xf32>
    %44 = arith.mulf %43, %0 : vector<8x256xf32>
    %c0_30 = arith.constant 0 : index
    %c0_31 = arith.constant 0 : index
    %45 = vector.load %arg8[%c0_30, %c0_31] : memref<256x32xf32, #tpu.memory_space<vmem>>, vector<256x32xf32>
    %cst_32 = arith.constant dense<0.000000e+00> : vector<8x32xf32>
    %46 = tpu.matmul %44, %45, %cst_32 {dimension_numbers = #tpu.dot_dimension_numbers<[1], [0], [0], [1], [0, 0, 1, 1], [], []>} : vector<8x256xf32>, vector<256x32xf32>, vector<8x32xf32> -> vector<8x32xf32>
    %47 = vector.extract_strided_slice %0 {offsets = [0, 224], sizes = [8, 32], strides = [1, 1]} : vector<8x256xf32> to vector<8x32xf32>
    %48 = tpu.concatenate %46, %47 in 1 : vector<8x32xf32>, vector<8x32xf32> -> vector<8x64xf32>
    %c0_33 = arith.constant 0 : index
    %c0_34 = arith.constant 0 : index
    %49 = vector.load %arg9[%c0_33, %c0_34] : memref<8x64xf32, #tpu.memory_space<vmem>>, vector<8x64xf32>
    tpu.vector_store %arg9[%c0_33, %c0_34], %48 {strides = array<i32>} : memref<8x64xf32, #tpu.memory_space<vmem>>, vector<8x64xf32>,
    return
  }
  func.func @transform_0(%arg0: i32) -> (i32, i32) {
    %c0_i32 = arith.constant 0 : i32
    %c0_i32_0 = arith.constant 0 : i32
    return %arg0, %c0_i32 : i32, i32
  }
  func.func @transform_1(%arg0: i32) -> (i32, i32) {
    %c0_i32 = arith.constant 0 : i32
    %c0_i32_0 = arith.constant 0 : i32
    %c0_i32_1 = arith.constant 0 : i32
    return %c0_i32, %c0_i32_0 : i32, i32
  }
  func.func @transform_2(%arg0: i32) -> (i32, i32) {
    %c0_i32 = arith.constant 0 : i32
    %c0_i32_0 = arith.constant 0 : i32
    %c0_i32_1 = arith.constant 0 : i32
    return %c0_i32, %c0_i32_0 : i32, i32
  }
  func.func @transform_3(%arg0: i32) -> (i32, i32) {
    %c0_i32 = arith.constant 0 : i32
    %c0_i32_0 = arith.constant 0 : i32
    %c0_i32_1 = arith.constant 0 : i32
    return %c0_i32, %c0_i32_0 : i32, i32
  }
  func.func @transform_4(%arg0: i32) -> (i32, i32) {
    %c0_i32 = arith.constant 0 : i32
    %c0_i32_0 = arith.constant 0 : i32
    %c0_i32_1 = arith.constant 0 : i32
    return %c0_i32, %c0_i32_0 : i32, i32
  }
  func.func @transform_5(%arg0: i32) -> (i32, i32) {
    %c0_i32 = arith.constant 0 : i32
    %c0_i32_0 = arith.constant 0 : i32
    %c0_i32_1 = arith.constant 0 : i32
    return %c0_i32, %c0_i32_0 : i32, i32
  }
  func.func @transform_6(%arg0: i32) -> (i32, i32) {
    %c0_i32 = arith.constant 0 : i32
    %c0_i32_0 = arith.constant 0 : i32
    %c0_i32_1 = arith.constant 0 : i32
    return %c0_i32, %c0_i32_0 : i32, i32
  }
  func.func @transform_7(%arg0: i32) -> (i32, i32) {
    %c0_i32 = arith.constant 0 : i32
    %c0_i32_0 = arith.constant 0 : i32
    %c0_i32_1 = arith.constant 0 : i32
    return %c0_i32, %c0_i32_0 : i32, i32
  }
  func.func @transform_8(%arg0: i32) -> (i32, i32) {
    %c0_i32 = arith.constant 0 : i32
    %c0_i32_0 = arith.constant 0 : i32
    return %arg0, %c0_i32 : i32, i32
  }
}

</mosaic_0001>

<bundles_post_ra>
// kernel: tpu_custom_call.1
= control target key start
LH: loop header
LB: loop body
LE: loop exit
PB: predicated region body
PF: predicated region fallthrough
CT: control target
= control target key end

     0   :  { %13 = vsyncpa [#allocation3], 0  ;;  %s1380_s0 = inlined_call_operand.vmem [shape: f32[16,256], index: 0, kind: input, shape index: {}]   ;;  %s1381_s1 = inlined_call_operand.vmem [shape: f32[256,128], index: 1, kind: input, shape index: {}]   ;;  %s1382_s2 = inlined_call_operand.vmem [shape: f32[3,128], index: 2, kind: input, shape index: {}]   ;;  %s1383_s3 = inlined_call_operand.vmem [shape: f32[128,8], index: 3, kind: input, shape index: {}]   ;;  %s1384_s4 = inlined_call_operand.vmem [shape: f32[8,128], index: 4, kind: input, shape index: {}]   ;;  %s1385_s5 = inlined_call_operand.vmem [shape: f32[128,8], index: 5, kind: input, shape index: {}]   ;;  %s1386_s6 = inlined_call_operand.vmem [shape: f32[8,256], index: 6, kind: input, shape index: {}]   ;;  %s1387_s7 = inlined_call_operand.vmem [shape: f32[256,32], index: 7, kind: input, shape index: {}]   ;;  %s1388_s8 = inlined_call_operand.hbm [shape: f32[16,64], index: 8, kind: output, shape index: {}]  }
   0x1   :  { %15 = vsyncpa [#allocation3 + $0x1], 0  ;;  %s946_s27 = smov 0   ;;  %s948_s28 = smov 0  }
   0x2   :  { %s950_s29 = smov 0   ;;  %s952_s30 = smov 0  }
   0x3 LB: > { %s967_s9 = sadd.s32 4294967295, %s898_s30   ;;  %s769_s10 = sadd.s32 4294967294, %s898_s30   ;;  %s898_s30 = sphi %s952_s30, %s1394_s30   ;;  %s894_s29 = sphi %s950_s29, %s1393_s29   ;;  %s890_s28 = sphi %s948_s28, %s1392_s28   ;;  %s886_s27 = sphi %s946_s27, %s1391_s27  }
   0x4   : > { %s971_s11 = sadd.s32 1, %s898_s30   ;;  %s201_s12 = sadd.s32 1, %s894_s29 }
   0x5   : > { %s198_s13 = ssub.s32 %s898_s30, %s971_s11  ;;  %p211_p0 = scmp.ne.s32.totalorder %s894_s29, %s890_s28 }
   0x6   : > { %p199_p1 = scmp.eq.s32.totalorder %s198_s13, 0  ;;  %p212_p2 = scmp.eq.s32.totalorder %s967_s9, 1 }
   0x7   : > { %p217_p3 = scmp.ne.s32.totalorder %s890_s28, %s886_s27  ;;  %p218_p4 = scmp.eq.s32.totalorder %s769_s10, 1 }
   0x8   : > { %s982_s14 = scalar_select %p199_p1, %s894_s29, %s201_s12  }
   0x9   : > { %p984_p5 = por %p212_p2, %p211_p0  ;;  %p988_p6 = por %p218_p4, %p217_p3 }
   0xa   : > { %p772_p7 = scmp.ge.s32.totalorder %s898_s30, 1  ;;  %p265_p8 = scmp.lt.s32.totalorder %s898_s30, 3 }
   0xc   : > { %p266_p9 = pnand %p772_p7, %p265_p8 }
   0xd   : > { %p299_p10 = scmp.lt.s32.totalorder (!%p266_p9), %s967_s9, 1  ;;  %s296_s21 = sand.u32 (!%p266_p9), 1, %s890_s28  }
   0xe   : > { %269 = sbr.rel (%p266_p9) target bundleno = 1420 (0x58c), region = 52  ;;  %s773_s22 = sshll.u32 (!%p266_p9), %s296_s21, 3 }
   0xf   : > { %s298_s10 = scalar_lea.vmem (!%p266_p9), [#allocation2], %s773_s22  ;;  %s856_s22 = scalar_lea.hbm (!%p266_p9), %s1388_s8, 16 }
  0x10   : > { %s707_s12 = sshll.u32 (!%p266_p9), %s298_s10, 4  ;;  %s708_s12 = int_to_ptr.vmem [resolvable:$true] %s707_s12 }
  0x13   : > { %v324_v0 = vld [vmem:[%s1381_s1 + $0x78] sm:$0xff]  ;;  %v323_v1 = vld [vmem:[%s1381_s1 + $0x70] sm:$0xff]  ;;  %v322_v4 = vld [vmem:[%s1381_s1 + $0x68] sm:$0xff]  ;;  %s300_s19 = scalar_select %p299_p10, %s967_s9, 1  ;;  %vm420_vm0 = vcmask 64512   ;;  %vm690_vm8 = vcmask 261120  }
  0x14   : > { %v340_v2 = vld [vmem:[%s1381_s1 + $0xf8] sm:$0xff]  ;;  %342 = vmatpush.msra.mxu0 %v324_v0  ;;  %v339_v3 = vld [vmem:[%s1381_s1 + $0xf0] sm:$0xff]  ;;  %v338_v5 = vld [vmem:[%s1381_s1 + $0xe8] sm:$0xff]  ;;  %vm692_vm9 = vcmask 523264  }
  0x15   : > { %362 = vmatpush.msra.mxu1 %v340_v2  ;;  %v321_v6 = vld [vmem:[%s1381_s1 + $0x60] sm:$0xff]  ;;  %v320_v8 = vld [vmem:[%s1381_s1 + $0x58] sm:$0xff]  ;;  %v319_v10 = vld [vmem:[%s1381_s1 + $0x50] sm:$0xff]  ;;  %s784_s20 = sshll.u32 %s300_s19, 4 }
  0x16   : > { %343 = vmatpush.msra.mxu0 %v323_v1  ;;  %v337_v7 = vld [vmem:[%s1381_s1 + $0xe0] sm:$0xff]  ;;  %v336_v9 = vld [vmem:[%s1381_s1 + $0xd8] sm:$0xff]  ;;  %v335_v11 = vld [vmem:[%s1381_s1 + $0xd0] sm:$0xff]  ;;  %s303_s23 = scalar_lea.vmem %s1380_s0, %s784_s20  ;;  %s900_s20 = smov 64  }
  0x17   : > { %363 = vmatpush.msra.mxu1 %v339_v3  ;;  %v318_v12 = vld [vmem:[%s1381_s1 + $0x48] sm:$0xff]  ;;  %v1039_v14 = vld [vmem:[%s1383_s3 + $0x78] sm:$0xff]  ;;  %v1044_v15 = vld [vmem:[%s1383_s3 + $0x70] sm:$0xff] }
  0x18   : > { %344 = vmatpush.msra.mxu0 %v322_v4  ;;  %v334_v13 = vld [vmem:[%s1381_s1 + $0xc8] sm:$0xff]  ;;  %v317_v16 = vld [vmem:[%s1381_s1 + $0x40] sm:$0xff]  ;;  %398 = vmatpush.msra.mxu2 %v1039_v14  ;;  %v316_v19 = vld [vmem:[%s1381_s1 + $0x38] sm:$0xff] }
  0x19   : > { %364 = vmatpush.msra.mxu1 %v338_v5  ;;  %v333_v17 = vld [vmem:[%s1381_s1 + $0xc0] sm:$0xff]  ;;  %v1056_v18 = vld [vmem:[%s1383_s3 + $0x68] sm:$0xff]  ;;  %v332_v20 = vld [vmem:[%s1381_s1 + $0xb8] sm:$0xff] }
  0x1a   : > { %345 = vmatpush.msra.mxu0 %v321_v6  ;;  %399 = vmatpush.msra.mxu2 %v1044_v15  ;;  %v315_v21 = vld [vmem:[%s1381_s1 + $0x30] sm:$0xff]  ;;  %v1072_v22 = vld [vmem:[%s1383_s3 + $0x60] sm:$0xff]  ;;  %v1081_v24 = vld [vmem:[%s1383_s3 + $0x58] sm:$0xff] }
  0x1b   : > { %365 = vmatpush.msra.mxu1 %v337_v7  ;;  %v331_v23 = vld [vmem:[%s1381_s1 + $0xb0] sm:$0xff]  ;;  %v314_v25 = vld [vmem:[%s1381_s1 + $0x28] sm:$0xff]  ;;  %v313_v28 = vld [vmem:[%s1381_s1 + $0x20] sm:$0xff] }
  0x1c   : > { %346 = vmatpush.msra.mxu0 %v320_v8  ;;  %400 = vmatpush.msra.mxu2 %v1056_v18  ;;  %v330_v26 = vld [vmem:[%s1381_s1 + $0xa8] sm:$0xff]  ;;  %v1094_v27 = vld [vmem:[%s1383_s3 + $0x50] sm:$0xff]  ;;  %v329_v29 = vld [vmem:[%s1381_s1 + $0xa0] sm:$0xff] }
  0x1d   : > { %366 = vmatpush.msra.mxu1 %v336_v9  ;;  %v391_v30 = vld [vmem:[%s1383_s3 + $0x48] sm:$0xff]  ;;  %v312_v31 = vld [vmem:[%s1381_s1 + $0x18] sm:$0xff]  ;;  %v390_v33 = vld [vmem:[%s1383_s3 + $0x40] sm:$0xff] }
  0x1e   : > { %347 = vmatpush.msra.mxu0 %v319_v10  ;;  %401 = vmatpush.msra.mxu2 %v1072_v22  ;;  %v328_v32 = vld [vmem:[%s1381_s1 + $0x98] sm:$0xff]  ;;  %v311_v34 = vld [vmem:[%s1381_s1 + $0x10] sm:$0xff]  ;;  %v310_v37 = vld [vmem:[%s1381_s1 + $0x8] sm:$0xff] }
  0x1f   : > { %367 = vmatpush.msra.mxu1 %v335_v11  ;;  %v327_v35 = vld [vmem:[%s1381_s1 + $0x90] sm:$0xff]  ;;  %v389_v36 = vld [vmem:[%s1383_s3 + $0x38] sm:$0xff]  ;;  %v326_v38 = vld [vmem:[%s1381_s1 + $0x88] sm:$0xff] }
  0x20   : > { %348 = vmatpush.msra.mxu0 %v318_v12  ;;  %402 = vmatpush.msra.mxu2 %v1081_v24  ;;  %v388_v39 = vld [vmem:[%s1383_s3 + $0x30] sm:$0xff]  ;;  %v309_v40 = vld [vmem:[%s1381_s1] sm:$0xff]  ;;  %v1145_v43 = vld [vmem:[%s303_s23 + $0x8] sm:$0xff] }
  0x21   : > { %368 = vmatpush.msra.mxu1 %v334_v13  ;;  %v325_v41 = vld [vmem:[%s1381_s1 + $0x80] sm:$0xff]  ;;  %v387_v44 = vld [vmem:[%s1383_s3 + $0x28] sm:$0xff]  ;;  %v385_v46 = vld [vmem:[%s1383_s3 + $0x18] sm:$0xff]  ;;  %687 = vrot.lane.b32.xlu1 %v1145_v43, %s900_s20  ;;  %s695_s20 = scalar_lea.sflag [#allocation3], %s296_s21 }
  0x22   : > { %349 = vmatpush.msra.mxu0 %v317_v16  ;;  %403 = vmatpush.msra.mxu2 %v1094_v27  ;;  %v1143_v42 = vld [vmem:[%s303_s23] sm:$0xff]  ;;  %v384_v47 = vld [vmem:[%s1383_s3 + $0x10] sm:$0xff]  ;;  %v383_v48 = vld [vmem:[%s1383_s3 + $0x8] sm:$0xff]  ;;  %s781_s23 = sshll.u32 %s967_s9, 3 }
  0x23   : > { %369 = vmatpush.msra.mxu1 %v333_v17  ;;  %v386_v45 = vld [vmem:[%s1383_s3 + $0x20] sm:$0xff]  ;;  %v522_v61 = vld [vmem:[%s1385_s5 + $0x78] sm:$0xff]  ;;  %v521_v62 = vld [vmem:[%s1385_s5 + $0x70] sm:$0xff]  ;;  %s705_s26 = scalar_lea.hbm %s1388_s8, %s781_s23 }
  0x24   : > { %350 = vmatpush.msra.mxu0 %v316_v19  ;;  %404 = vmatpush.msra.mxu2 %v391_v30  ;;  %v382_v49 = vld [vmem:[%s1383_s3] sm:$0xff]  ;;  %v520_v63 = vld [vmem:[%s1385_s5 + $0x68] sm:$0xff]  ;;  %v518_v1 = vld [vmem:[%s1385_s5 + $0x58] sm:$0xff]  ;;  %s709_s19 = sshll.u32 %s705_s26, 4  ;;  %s710_s19 = int_to_ptr.hbm [resolvable:$true] %s709_s19 }
  0x25   : > { %370 = vmatpush.msra.mxu1 %v332_v20  ;;  %v825_v50 = vld [vmem:[%s1382_s2] ss:$0 sm:$0xff]  ;;  %v517_v2 = vld [vmem:[%s1385_s5 + $0x50] sm:$0xff]  ;;  %v516_v5 = vld [vmem:[%s1385_s5 + $0x48] sm:$0xff]  ;;  %s850_s9 = sshra.s32 %s710_s19, 4  ;;  %s851_s9 = int_to_ptr.hbm [resolvable:$true] %s850_s9 }
  0x26   : > { %351 = vmatpush.msra.mxu0 %v315_v21  ;;  %405 = vmatpush.msra.mxu2 %v390_v33  ;;  %v419_v55 = vld [vmem:[%s1384_s4] sm:$0xff]  ;;  %v514_v8 = vld [vmem:[%s1385_s5 + $0x38] sm:$0xff]  ;;  %v513_v16 = vld [vmem:[%s1385_s5 + $0x30] sm:$0xff]  ;;  %s852_s13 = scalar_lea.hbm %s851_s9, 8  ;;  %p857_p0 = scmp.lt.s32.totalorder %s851_s9, %s1388_s8 }
  0x27   : > { %371 = vmatpush.msra.mxu1 %v331_v23  ;;  %439 = vmatpush.msra.mxu3 %v419_v55  ;;  %v519_v0 = vld [vmem:[%s1385_s5 + $0x60] sm:$0xff]  ;;  %v512_v17 = vld [vmem:[%s1385_s5 + $0x28] sm:$0xff]  ;;  %v510_v19 = vld [vmem:[%s1385_s5 + $0x18] sm:$0xff]  ;;  %p853_p11 = scmp.ne.s32.totalorder %s851_s9, %s852_s13  ;;  %p858_p1 = scmp.lt.s32.totalorder %s856_s22, %s852_s13 }
  0x28   : > { %352 = vmatpush.msra.mxu0 %v314_v25  ;;  %406 = vmatpush.msra.mxu2 %v389_v36  ;;  %v515_v7 = vld [vmem:[%s1385_s5 + $0x40] sm:$0xff]  ;;  %v509_v20 = vld [vmem:[%s1385_s5 + $0x10] sm:$0xff]  ;;  %v508_v21 = vld [vmem:[%s1385_s5 + $0x8] sm:$0xff] }
  0x29   : > { %372 = vmatpush.msra.mxu1 %v330_v26  ;;  %446 = vmatpush.msrb.mxu3 %v1039_v14  ;;  %v826_v23 = vld [vmem:[%s1382_s2 + $0x1] ss:$0 sm:$0xff]  ;;  %v827_v26 = vld [vmem:[%s1382_s2 + $0x2] ss:$0 sm:$0xff]  ;;  %p854_p12 = pnand %p853_p11, %p984_p5  ;;  %p859_p2 = por %p858_p1, %p857_p0 }
  0x2a   : > { %353 = vmatpush.msra.mxu0 %v313_v28  ;;  %407 = vmatpush.msra.mxu2 %v388_v39 }
  0x2b   : > { %373 = vmatpush.msra.mxu1 %v329_v29  ;;  %447 = vmatpush.msrb.mxu3 %v1044_v15  ;;  %p855_p13 = pneg %p854_p12 }
  0x2c   : > { %354 = vmatpush.msra.mxu0 %v312_v31  ;;  %408 = vmatpush.msra.mxu2 %v387_v44 }
  0x2d   : > { %374 = vmatpush.msra.mxu1 %v328_v32  ;;  %448 = vmatpush.msrb.mxu3 %v1056_v18  ;;  %v511_v18 = vld [vmem:[%s1385_s5 + $0x20] sm:$0xff]  ;;  %p860_p3 = pnand %p859_p2, %p855_p13 }
  0x2e   : > { %355 = vmatpush.msra.mxu0 %v311_v34  ;;  %409 = vmatpush.msra.mxu2 %v386_v45 }
  0x2f   : > { %375 = vmatpush.msra.mxu1 %v327_v35  ;;  %449 = vmatpush.msrb.mxu3 %v1072_v22  ;;  %v507_v22 = vld [vmem:[%s1385_s5] sm:$0xff] }
  0x30   : > { %356 = vmatpush.msra.mxu0 %v310_v37  ;;  %410 = vmatpush.msra.mxu2 %v385_v46  ;;  %v567_v37 = vld [vmem:[%s1386_s6] sm:$0xff] }
  0x31   : > { %376 = vmatpush.msra.mxu1 %v326_v38  ;;  %450 = vmatpush.msrb.mxu3 %v1081_v24  ;;  %v568_v38 = vld [vmem:[%s1386_s6 + $0x8] sm:$0xff] }
  0x32   : > { %357 = vmatpush.msra.mxu0 %v309_v40  ;;  %411 = vmatpush.msra.mxu2 %v384_v47  ;;  %v628_v40 = vld [vmem:[%s1387_s7 + $0x70] sm:$0xff] }
  0x33   : > { %377 = vmatpush.msra.mxu1 %v325_v41  ;;  %358 = vmatmul.f32.vlgmr.msra.gmra.mxu0 %v1143_v42  ;;  %v645_v41 = vld [vmem:[%s1387_s7 + $0xf8] sm:$0xff] }
  0x34   : > { %378 = vmatmul.f32.vlgmr.msra.gmra.mxu1 %v1145_v43  ;;  %412 = vmatpush.msra.mxu2 %v383_v48 }
  0x35   : > { %451 = vmatpush.msrb.mxu3 %v1094_v27  ;;  %523 = vmatpush.msrb.mxu1 %v522_v61  ;;  %v621_v61 = vld [vmem:[%s1387_s7 + $0x38] sm:$0xff] }
  0x36   : > { %413 = vmatpush.msra.mxu2 %v382_v49 }
  0x37   : > { %452 = vmatpush.msrb.mxu3 %v391_v30  ;;  %524 = vmatpush.msrb.mxu1 %v521_v62 }
  0x38   : > { %666 = vmatpush.msrb.mxu2 %v645_v41 }
  0x39   : > { %453 = vmatpush.msrb.mxu3 %v390_v33  ;;  %525 = vmatpush.msrb.mxu1 %v520_v63  ;;  %v637_v63 = vld [vmem:[%s1387_s7 + $0xb8] sm:$0xff] }
  0x3b   : > { %454 = vmatpush.msrb.mxu3 %v389_v36  ;;  %526 = vmatpush.msrb.mxu1 %v519_v0 }
  0x3d   : > { %455 = vmatpush.msrb.mxu3 %v388_v39  ;;  %527 = vmatpush.msrb.mxu1 %v518_v1  ;;  %v629_v39 = vld [vmem:[%s1387_s7 + $0x78] sm:$0xff] }
  0x3e   : > { %646 = vmatpush.msrb.mxu0 %v629_v39 }
  0x3f   : > { %456 = vmatpush.msrb.mxu3 %v387_v44  ;;  %528 = vmatpush.msrb.mxu1 %v517_v2  ;;  %v627_v44 = vld [vmem:[%s1387_s7 + $0x68] sm:$0xff]  ;;  %v620_v2 = vld [vmem:[%s1387_s7 + $0x30] sm:$0xff] }
  0x40   : > { %647 = vmatpush.msrb.mxu0 %v628_v40 }
  0x41   : > { %457 = vmatpush.msrb.mxu3 %v386_v45  ;;  %529 = vmatpush.msrb.mxu1 %v516_v5  ;;  %v644_v45 = vld [vmem:[%s1387_s7 + $0xf0] sm:$0xff]  ;;  %v619_v5 = vld [vmem:[%s1387_s7 + $0x28] sm:$0xff] }
  0x42   : > { %667 = vmatpush.msrb.mxu2 %v644_v45  ;;  %648 = vmatpush.msrb.mxu0 %v627_v44 }
  0x43   : > { %458 = vmatpush.msrb.mxu3 %v385_v46  ;;  %530 = vmatpush.msrb.mxu1 %v515_v7  ;;  %v643_v46 = vld [vmem:[%s1387_s7 + $0xe8] sm:$0xff] }
  0x44   : > { %668 = vmatpush.msrb.mxu2 %v643_v46 }
  0x45   : > { %459 = vmatpush.msrb.mxu3 %v384_v47  ;;  %531 = vmatpush.msrb.mxu1 %v514_v8  ;;  %v618_v8 = vld [vmem:[%s1387_s7 + $0x20] sm:$0xff] }
  0x47   : > { %460 = vmatpush.msrb.mxu3 %v383_v48  ;;  %532 = vmatpush.msrb.mxu1 %v513_v16  ;;  %v626_v48 = vld [vmem:[%s1387_s7 + $0x60] sm:$0xff] }
  0x48   : > { %649 = vmatpush.msrb.mxu0 %v626_v48  ;;  %v634_v16 = vld [vmem:[%s1387_s7 + $0xa0] sm:$0xff] }
  0x49   : > { %461 = vmatpush.msrb.mxu3 %v382_v49  ;;  %533 = vmatpush.msrb.mxu1 %v512_v17  ;;  %v642_v49 = vld [vmem:[%s1387_s7 + $0xe0] sm:$0xff]  ;;  %v633_v17 = vld [vmem:[%s1387_s7 + $0x98] sm:$0xff] }
  0x4a   : > { %669 = vmatpush.msrb.mxu2 %v642_v49 }
  0x4b   : > { %534 = vmatpush.msrb.mxu1 %v511_v18  ;;  %v632_v18 = vld [vmem:[%s1387_s7 + $0x90] sm:$0xff] }
  0x4d   : > { %535 = vmatpush.msrb.mxu1 %v510_v19  ;;  %v631_v19 = vld [vmem:[%s1387_s7 + $0x88] sm:$0xff] }
  0x4f   : > { %536 = vmatpush.msrb.mxu1 %v509_v20  ;;  %v630_v20 = vld [vmem:[%s1387_s7 + $0x80] sm:$0xff] }
  0x51   : > { %537 = vmatpush.msrb.mxu1 %v508_v21 }
  0x53   : > { %538 = vmatpush.msrb.mxu1 %v507_v22 }
  0xb0   : > { %v359_v51 = vpop.f32.mrf.mxu0 }
  0xb1   : > { %v379_v52 = vpop.f32.mrf.mxu1  ;;  %v360_v53 = vadd.f32 %v825_v50, %v359_v51  ;;  %v625_v50 = vld [vmem:[%s1387_s7 + $0x58] sm:$0xff] }
  0xb2   : > { %v641_v51 = vld [vmem:[%s1387_s7 + $0xd8] sm:$0xff]  ;;  %650 = vmatpush.msrb.mxu0 %v625_v50 }
  0xb3   : > { %v380_v54 = vadd.f32 %v379_v52, %v360_v53  ;;  %v624_v52 = vld [vmem:[%s1387_s7 + $0x50] sm:$0xff]  ;;  %670 = vmatpush.msrb.mxu2 %v641_v51 }
  0xb4   : > { %v640_v53 = vld [vmem:[%s1387_s7 + $0xd0] sm:$0xff]  ;;  %651 = vmatpush.msrb.mxu0 %v624_v52 }
  0xb5   : > { %414 = vmatmul.f32.vlgmr.msra.gmra.mxu2 %v380_v54 }
  0xb6   : > { %671 = vmatpush.msrb.mxu2 %v640_v53 }
 0x138   : > { %v415_v56 = vpop.f32.mrf.mxu2 }
 0x139   : > { %v418_v57 = vmul.f32 0.0625, %v415_v56  ;;  %v639_v56 = vld [vmem:[%s1387_s7 + $0xc8] sm:$0xff] }
 0x13a   : > { %672 = vmatpush.msrb.mxu2 %v639_v56 }
 0x13b   : > { %776 = vmatmul.msk.f32.vlgmr.msra.gmra.mxu3 %vm420_vm0, %v418_v57 }
 0x13c   : > { %496 = vmatpush.msra.mxu3 %v419_v55 }
 0x1be   : > { %v441_v58 = vpop.f32.mrf.mxu3 }
 0x1bf   : > { %v444_v59 = vsub.f32 %v380_v54, %v441_v58  ;;  %v623_v54 = vld [vmem:[%s1387_s7 + $0x48] sm:$0xff]  ;;  %v622_v58 = vld [vmem:[%s1387_s7 + $0x40] sm:$0xff] }
 0x1c0   : > { %652 = vmatpush.msrb.mxu0 %v623_v54 }
 0x1c1   : > { %v445_v60 = vmul.f32 %v444_v59, %v444_v59 }
 0x1c2   : > { %653 = vmatpush.msrb.mxu0 %v622_v58 }
 0x1c3   : > { %462 = vmatmul.f32.vlgmr.msrb.gmra.mxu3 %v445_v60 }
 0x1c4   : > { %587 = vmatpush.msrb.mxu3 %v567_v37  ;;  %654 = vmatpush.msrb.mxu0 %v621_v61 }
 0x1c6   : > { %655 = vmatpush.msrb.mxu0 %v620_v2 }
 0x1c8   : > { %656 = vmatpush.msrb.mxu0 %v619_v5 }
 0x1ca   : > { %657 = vmatpush.msrb.mxu0 %v618_v8 }
 0x246   : > { %v463_v3 = vpop.f32.mrf.mxu3 }
 0x247   : > { %v466_v4 = vmul.f32 0.0625, %v463_v3  ;;  %v636_v3 = vld [vmem:[%s1387_s7 + $0xb0] sm:$0xff] }
 0x249   : > { %v467_v6 = vadd.f32 1e-05, %v466_v4 }
 0x24b   : > { %828 = vrsqrt.f32 %v467_v6  ;;  %vm474_vm2 = vweird.f32 %v467_v6 }
 0x251   : > { %v829_v9 = vpop.eup %828 }
 0x252   : > { %v469_v10 = vmul.f32 %v829_v9, %v467_v6  ;;  %vm475_vm1 = vweird.f32 %v829_v9 }
 0x253   : > { %vm476_vm3 = vmor %vm474_vm2, %vm475_vm1 }
 0x254   : > { %v470_v11 = vmul.f32 %v829_v9, %v469_v10 }
 0x256   : > { %v471_v12 = vmul.f32 0.5, %v470_v11  ;;  %v617_v11 = vld [vmem:[%s1387_s7 + $0x18] sm:$0xff] }
 0x257   : > { %658 = vmatpush.msrb.mxu0 %v617_v11 }
 0x258   : > { %v472_v13 = vsub.f32 1.5, %v471_v12  ;;  %v616_v12 = vld [vmem:[%s1387_s7 + $0x10] sm:$0xff] }
 0x259   : > { %659 = vmatpush.msrb.mxu0 %v616_v12 }
 0x25a   : > { %v473_v14 = vmul.f32 %v829_v9, %v472_v13  ;;  %v615_v13 = vld [vmem:[%s1387_s7 + $0x8] sm:$0xff] }
 0x25b   : > { %660 = vmatpush.msrb.mxu0 %v615_v13 }
 0x25c   : > { %v477_v15 = vsel %vm476_vm3, %v829_v9, %v473_v14  ;;  %v635_v14 = vld [vmem:[%s1387_s7 + $0xa8] sm:$0xff] }
 0x25d   : > { %777 = vmatmul.msk.f32.vlgmr.msra.gmra.mxu3 %vm420_vm0, %v477_v15  ;;  %v614_v15 = vld [vmem:[%s1387_s7] sm:$0xff] }
 0x25e   : > { %607 = vmatpush.msra.mxu3 %v568_v38  ;;  %661 = vmatpush.msrb.mxu0 %v614_v15 }
 0x2e0   : > { %v498_v24 = vpop.f32.mrf.mxu3 }
 0x2e1   : > { %v501_v25 = vmul.f32 %v498_v24, %v444_v59  ;;  %v638_v59 = vld [vmem:[%s1387_s7 + $0xc0] sm:$0xff] }
 0x2e2   : > { %673 = vmatpush.msrb.mxu2 %v638_v59 }
 0x2e3   : > { %v503_v27 = vmul.f32 %v826_v23, %v501_v25  ;;  %v688_v25 = vpop.permute.xlu1 %687 }
 0x2e4   : > { %674 = vmatpush.msrb.mxu2 %v637_v63 }
 0x2e5   : > { %v505_v28 = vadd.f32 %v827_v26, %v503_v27 }
 0x2e6   : > { %675 = vmatpush.msrb.mxu2 %v636_v3 }
 0x2e7   : > { %830 = vtanh.f32 %v505_v28 }
 0x2e8   : > { %676 = vmatpush.msrb.mxu2 %v635_v14 }
 0x2ea   : > { %677 = vmatpush.msrb.mxu2 %v634_v16 }
 0x2ec   : > { %678 = vmatpush.msrb.mxu2 %v633_v17 }
 0x2ed   : > { %v831_v29 = vpop.eup %830 }
 0x2ee   : > { %539 = vmatmul.f32.vlgmr.msrb.gmra.mxu1 %v831_v29  ;;  %679 = vmatpush.msrb.mxu2 %v632_v18 }
 0x2f0   : > { %680 = vmatpush.msrb.mxu2 %v631_v19 }
 0x2f2   : > { %681 = vmatpush.msrb.mxu2 %v630_v20 }
 0x36b   : > { %v540_v30 = vpop.f32.mrf.mxu1 }
 0x36c   : > { %v543_v31 = vsel %vm420_vm0, %v540_v30, -inf }
 0x36d   : > { %544 = vmax.xlane.f32.xlu0 %v543_v31 }
 0x3e0   : > { %v545_v32 = vpop.xlane.xlu0 %544 }
 0x3e1   : > { %v546_v33 = vsub.f32 %v540_v30, %v545_v32 }
 0x3e3   : > { %v547_v34 = vmul.f32 1.442695, %v546_v33 }
 0x3e5   : > { %832 = vpow2.f32 %v547_v34 }
 0x3eb   : > { %v1236_v35 = vpop.eup %832 }
 0x3ec   : > { %v549_v36 = vsel %vm420_vm0, %v1236_v35, 0.0 }
 0x3ed   : > { %550 = vadd.xlane.f32.xlu0 %v549_v36 }
 0x460   : > { %v551_v47 = vpop.xlane.xlu0 %550 }
 0x461   : > { %834 = vrcp.f32 %v551_v47  ;;  %v563_v62 = vand.u32 2147483648, %v551_v47  ;;  %v561_v1 = vand.u32 2147483647, %v551_v47  ;;  %vm557_vm5 = vweird.f32 %v551_v47 }
 0x463   : > { %v564_v6 = vor.u32 1.1754944e-38, %v563_v62  ;;  %vm562_vm7 = vcmp.eq.f32.partialorder %v561_v1, 8.507059e+37 }
 0x467   : > { %v835_v55 = vpop.eup %834 }
 0x468   : > { %v553_v57 = vmul.f32 %v835_v55, %v551_v47  ;;  %vm558_vm4 = vweird.f32 %v835_v55 }
 0x469   : > { %vm559_vm6 = vmor %vm557_vm5, %vm558_vm4 }
 0x46a   : > { %v554_v60 = vsub.f32 1.0, %v553_v57 }
 0x46c   : > { %v555_v0 = vmul.f32 %v835_v55, %v554_v60 }
 0x46e   : > { %v556_v4 = vadd.f32 %v835_v55, %v555_v0 }
 0x470   : > { %v560_v7 = vsel %vm559_vm6, %v835_v55, %v556_v4 }
 0x471   : > { %v565_v9 = vsel %vm562_vm7, %v564_v6, %v560_v7 }
 0x472   : > { %v566_v10 = vmul.f32 %v1236_v35, %v565_v9 }
 0x474   : > { %778 = vmatmul.msk.f32.vlgmr.msrb.gmra.mxu3 %vm420_vm0, %v566_v10 }
 0x47c   : > { %779 = vmatmul.msk.f32.vlgmr.msra.gmra.mxu3 %vm420_vm0, %v566_v10 }
 0x4f7   : > { %v589_v21 = vpop.f32.mrf.mxu3 }
 0x4f8   : > { %v612_v22 = vmul.f32 %v589_v21, %v1143_v42 }
 0x4fa   : > { %662 = vmatmul.f32.vlgmr.msrb.gmra.mxu0 %v612_v22 }
 0x4ff   : > { %v609_v23 = vpop.f32.mrf.mxu3 }
 0x500   : > { %v613_v24 = vmul.f32 %v609_v23, %v1145_v43 }
 0x502   : > { %682 = vmatmul.f32.vlgmr.msrb.gmra.mxu2 %v613_v24 }
 0x577   : > { %v663_v26 = vpop.f32.mrf.mxu0 }
 0x585   : > { %v683_v27 = vpop.f32.mrf.mxu2 }
 0x586   : > { %v684_v42 = vadd.f32 %v683_v27, %v663_v26 }
 0x588   : > { %v691_v43 = vsel %vm690_vm8, %v684_v42, %v688_v25 }
 0x589   : > { %693 = vst.msk [vmem:[%s298_s10] sm:$0xff] %vm692_vm9, %v691_v43 }
 0x58a   : > { %863 = shalt.err (!%p860_p3)
}
 0x58b   : > { %785 = dma.vmem_to_hbm [thread:$0]  (%p984_p5), %s708_s12, 128, %s710_s19, %s695_s20  }
 0x58c PF: > { %p791_p4 = scmp.ge.s32.totalorder %s898_s30, 2  ;;  %s721_s21 = sand.u32 1, %s886_s27  }
 0x58d   : > { %s722_s25 = scalar_lea.sflag [#allocation3], %s721_s21 }
 0x58e   : > { %p788_p7 = pnand %p791_p4, %p988_p6 }
 0x590   : > { %p789_p8 = pneg %p788_p7 }
 0x592   : > { %881 = dma.done.wait (%p789_p8), %s722_s25, 128  }
 0x593   : > { %883 = vsyncadd (%p789_p8), %s722_s25, 4294967168  ;;  %p18_p9 = scmp.ge.s32.totalorder %s971_s11, 4   ;;  %s1391_s27 = smov %s890_s28 }
 0x594   : > { %s1392_s28 = smov %s894_s29  ;;  %s1393_s29 = smov %s982_s14 }
 0x595   : > { %s1394_s30 = smov %s971_s11  ;;  %20 = sbr.rel (!%p18_p9) target bundleno = 3 (0x3), region = 87 }
 0x59a   :  { %728 = vsyncpa [#allocation3], 1 }
 0x59b   :  { %730 = vsyncpa [#allocation3 + $0x1], 1 }

</bundles_post_ra>
